<compile_context>
chip_gen: v7x
topology: tpu7x:2x2x1
jax: 0.10.0
libtpu: 0.0.40
codegen_flags: <defaults>
</compile_context>

<pallas_src>
import functools

import jax
import jax.numpy as jnp
from jax.experimental import pallas as pl
from jax.experimental.pallas import tpu as pltpu

LANE = 128        # TPU lane width (last dim)
TM_MAX = 2048     # max sublane rows per block: (2048, 128) f32 = 1 MiB
NEG_BIG = -30000.0  # sigmoid(NEG_BIG) == 0 and softplus(NEG_BIG) == 0 exactly


def _dice_bce_sums_kernel(x_ref, t_ref, o_ref, *, tm, valid_rows, need_row_mask):
    """Accumulate per-core partial sums into a resident (1,4,8,128) block.

    o_ref[0, 0] += partial sum(p*t)
    o_ref[0, 1] += partial sum(p)
    o_ref[0, 2] += partial sum(t)
    o_ref[0, 3] += partial sum(bce)
    """
    c = pl.program_id(0)   # core / row-range axis ("parallel")
    i = pl.program_id(1)   # streaming reduction axis ("arbitrary")

    @pl.when(i == 0)
    def _init():
        o_ref[...] = jnp.zeros_like(o_ref)

    x = x_ref[...].astype(jnp.float32)
    t = t_ref[...].astype(jnp.float32)

    if need_row_mask:
        # Last block of the last core may extend past the real row count;
        # neutralize those rows so they contribute exactly 0 to every sum.
        inner = pl.num_programs(1)
        row_start = (c * inner + i) * tm
        local_rows = jax.lax.broadcasted_iota(jnp.int32, (tm, LANE), 0)
        mask = (row_start + local_rows) < valid_rows
        x = jnp.where(mask, x, NEG_BIG)
        t = jnp.where(mask, t, 0.0)

    # Fused, numerically stable sigmoid + BCE-with-logits using one exp.
    e = jnp.exp(-jnp.abs(x))           # exp(-|x|)  in (0, 1]
    inv = 1.0 / (1.0 + e)
    p = jnp.where(x >= 0.0, inv, e * inv)              # sigmoid(x)
    softplus = jnp.maximum(x, 0.0) + jnp.log(1.0 + e)  # log(1 + exp(x))
    bce = softplus - t * x                             # -[t*log p + (1-t)*log(1-p)]

    # Fold (TM, 128) -> (TM//8, 8, 128) and reduce the leading axis: pure
    # cross-vreg VPU adds, no per-step XLU cross-lane reduction.
    def fold(v):
        return jnp.sum(v.reshape(tm // 8, 8, LANE), axis=0)

    o_ref[0, 0] += fold(p * t)
    o_ref[0, 1] += fold(p)
    o_ref[0, 2] += fold(t)
    o_ref[0, 3] += fold(bce)


@functools.partial(jax.jit, static_argnames=("smooth",))
def dice_bce_loss(inputs, targets, smooth=1.0):
    n = inputs.size  # true element count (static) -> BCE mean divisor

    x = inputs.reshape(-1)
    t = targets.reshape(-1)

    # View the flat array as (rows, 128) with rows % 8 == 0. For the common
    # case (n % 1024 == 0) this reshape is free (no copy, no padding).
    chunk = 8 * LANE
    n_pad = (-n) % chunk
    if n_pad:
        # TODO(synk): rare unaligned case still copies; a 1-D BlockSpec +
        # in-kernel lane mask would avoid it.
        x = jnp.concatenate([x, jnp.full((n_pad,), NEG_BIG, x.dtype)])
        t = jnp.concatenate([t, jnp.zeros((n_pad,), t.dtype)])

    rows = (n + n_pad) // LANE
    x2d = x.reshape(rows, LANE)
    t2d = t.reshape(rows, LANE)

    tm = min(TM_MAX, rows)                    # multiple of 8 by construction
    n_blocks = (rows + tm - 1) // tm          # static
    need_row_mask = (rows % tm) != 0

    # Shard the row-block range over 2 TensorCores when it splits evenly
    # (v7x megacore; harmless serial loop on single-core v5e/v6e).
    ncores = 2 if (n_blocks >= 2 and n_blocks % 2 == 0) else 1
    inner = n_blocks // ncores

    kernel = functools.partial(
        _dice_bce_sums_kernel, tm=tm, valid_rows=rows, need_row_mask=need_row_mask
    )

    partials = pl.pallas_call(
        kernel,
        out_shape=jax.ShapeDtypeStruct((ncores, 4, 8, LANE), jnp.float32),
        grid_spec=pltpu.PrefetchScalarGridSpec(
            num_scalar_prefetch=0,
            grid=(ncores, inner),
            in_specs=[
                pl.BlockSpec((tm, LANE), lambda c, i, inner=inner: (c * inner + i, 0)),
                pl.BlockSpec((tm, LANE), lambda c, i, inner=inner: (c * inner + i, 0)),
            ],
            out_specs=pl.BlockSpec((1, 4, 8, LANE), lambda c, i: (c, 0, 0, 0)),
        ),
        compiler_params=pltpu.CompilerParams(
            dimension_semantics=("parallel", "arbitrary")
        ),
    )(x2d, t2d)

    # Tiny final reductions + scalar glue in plain JAX.
    sums = jnp.sum(partials, axis=(0, 2, 3))  # (4,)
    intersection, p_sum, t_sum, bce_sum = sums[0], sums[1], sums[2], sums[3]

    dice_loss = 1.0 - (2.0 * intersection + smooth) / (p_sum + t_sum + smooth)
    bce = bce_sum / n
    return bce + dice_loss


def _reference_loss(inputs, targets, smooth=1.0):
    """Pure-JAX reference mirroring the PyTorch forward (sigmoid + clamped-log BCE)."""
    p = jax.nn.sigmoid(inputs.astype(jnp.float32)).reshape(-1)
    t = targets.astype(jnp.float32).reshape(-1)
    intersection = jnp.sum(p * t)
    dice_loss = 1.0 - (2.0 * intersection + smooth) / (jnp.sum(p) + jnp.sum(t) + smooth)
    log_p = jnp.maximum(jnp.log(p), -100.0)
    log_1mp = jnp.maximum(jnp.log(1.0 - p), -100.0)
    bce = jnp.mean(-(t * log_p + (1.0 - t) * log_1mp))
    return bce + dice_loss


if __name__ == "__main__":
    key = jax.random.PRNGKey(0)
    k1, k2 = jax.random.split(key)

    # NCHW, as the PyTorch module would receive (logits + binary targets).
    B, C, H, W = 2, 4, 16, 16
    inputs = jax.random.normal(k1, (B, C, H, W), dtype=jnp.float32)
    targets = jax.random.bernoulli(k2, 0.5, (B, C, H, W)).astype(jnp.float32)

    loss = dice_bce_loss(inputs, targets, smooth=1.0)
    loss = jax.block_until_ready(loss)

    ref = _reference_loss(inputs, targets, smooth=1.0)
    assert jnp.allclose(loss, ref, rtol=1e-5, atol=1e-5), (loss, ref)

    print("KERNEL_OK")
</pallas_src>

<mosaic_0001>
module attributes {stable_mosaic.version = 11 : i64} {
  func.func @_dice_bce_sums_kernel(%arg0: i32, %arg1: i32, %arg2: memref<16x128xf32, #tpu.memory_space<vmem>>, %arg3: memref<16x128xf32, #tpu.memory_space<vmem>>, %arg4: memref<1x4x8x128xf32, #tpu.memory_space<vmem>>) attributes {dimension_semantics = [#tpu.dimension_semantics<parallel>, #tpu.dimension_semantics<arbitrary>], iteration_bounds = array<i64: 1, 1>, scalar_prefetch = 0 : i64, scratch_operands = 0 : i64, tpu.core_type = #tpu.core_type<tc>, window_params = [{transform_indices = @transform_0, window_bounds = array<i64: 16, 128>}, {transform_indices = @transform_1, window_bounds = array<i64: 16, 128>}, {transform_indices = @transform_2, window_bounds = array<i64: 1, 4, 8, 128>}]} {
    %c0_i32 = arith.constant 0 : i32
    %0 = arith.cmpi eq, %arg1, %c0_i32 : i32
    %1 = arith.extui %0 : i1 to i32
    %c0_i32_0 = arith.constant 0 : i32
    %2 = arith.cmpi ne, %1, %c0_i32_0 : i32
    scf.if %2 {
      %cst_42 = arith.constant 0.000000e+00 : f32
      %58 = vector.broadcast %cst_42 : f32 to vector<1x4x8x128xf32>
      %c0_43 = arith.constant 0 : index
      %c0_44 = arith.constant 0 : index
      %c0_45 = arith.constant 0 : index
      %c0_46 = arith.constant 0 : index
      %59 = vector.load %arg4[%c0_43, %c0_44, %c0_45, %c0_46] : memref<1x4x8x128xf32, #tpu.memory_space<vmem>>, vector<1x4x8x128xf32>
      tpu.vector_store %arg4[%c0_43, %c0_44, %c0_45, %c0_46], %58 {strides = array<i32>} : memref<1x4x8x128xf32, #tpu.memory_space<vmem>>, vector<1x4x8x128xf32>,
    } else {
    }
    %c0 = arith.constant 0 : index
    %c0_1 = arith.constant 0 : index
    %3 = vector.load %arg2[%c0, %c0_1] : memref<16x128xf32, #tpu.memory_space<vmem>>, vector<16x128xf32>
    %c0_2 = arith.constant 0 : index
    %c0_3 = arith.constant 0 : index
    %4 = vector.load %arg3[%c0_2, %c0_3] : memref<16x128xf32, #tpu.memory_space<vmem>>, vector<16x128xf32>
    %5 = math.absf %3 : vector<16x128xf32>
    %cst = arith.constant 0.000000e+00 : f32
    %6 = vector.broadcast %cst : f32 to vector<16x128xf32>
    %7 = arith.subf %6, %5 : vector<16x128xf32>
    %8 = math.exp %7 : vector<16x128xf32>
    %cst_4 = arith.constant 1.000000e+00 : f32
    %9 = vector.broadcast %cst_4 : f32 to vector<16x128xf32>
    %10 = arith.addf %9, %8 : vector<16x128xf32>
    %cst_5 = arith.constant 1.000000e+00 : f32
    %11 = vector.broadcast %cst_5 : f32 to vector<16x128xf32>
    %12 = arith.divf %11, %10 : vector<16x128xf32>
    %cst_6 = arith.constant 0.000000e+00 : f32
    %13 = vector.broadcast %cst_6 : f32 to vector<16x128xf32>
    %14 = arith.cmpf oge, %3, %13 : vector<16x128xf32>
    %15 = arith.mulf %8, %12 : vector<16x128xf32>
    %16 = arith.select %14, %12, %15 : vector<16x128xi1>, vector<16x128xf32>
    %cst_7 = arith.constant 0.000000e+00 : f32
    %17 = vector.broadcast %cst_7 : f32 to vector<16x128xf32>
    %18 = arith.maximumf %3, %17 : vector<16x128xf32>
    %cst_8 = arith.constant 1.000000e+00 : f32
    %19 = vector.broadcast %cst_8 : f32 to vector<16x128xf32>
    %20 = arith.addf %19, %8 : vector<16x128xf32>
    %21 = math.log %20 : vector<16x128xf32>
    %22 = arith.addf %18, %21 : vector<16x128xf32>
    %23 = arith.mulf %4, %3 : vector<16x128xf32>
    %24 = arith.subf %22, %23 : vector<16x128xf32>
    %c0_9 = arith.constant 0 : index
    %c0_10 = arith.constant 0 : index
    %c0_11 = arith.constant 0 : index
    %c0_12 = arith.constant 0 : index
    %25 = vector.load %arg4[%c0_9, %c0_10, %c0_11, %c0_12] : memref<1x4x8x128xf32, #tpu.memory_space<vmem>>, vector<1x1x8x128xf32>
    %26 = vector.shape_cast %25 : vector<1x1x8x128xf32> to vector<8x128xf32>
    %27 = arith.mulf %16, %4 : vector<16x128xf32>
    %28 = vector.shape_cast %27 : vector<16x128xf32> to vector<2x8x128xf32>
    %cst_13 = arith.constant dense<0.000000e+00> : vector<8x128xf32>
    %29 = vector.multi_reduction <add>, %28, %cst_13 [0] : vector<2x8x128xf32> to vector<8x128xf32>
    %30 = arith.addf %26, %29 : vector<8x128xf32>
    %c0_14 = arith.constant 0 : index
    %c0_15 = arith.constant 0 : index
    %c0_16 = arith.constant 0 : index
    %c0_17 = arith.constant 0 : index
    %31 = vector.load %arg4[%c0_14, %c0_15, %c0_16, %c0_17] : memref<1x4x8x128xf32, #tpu.memory_space<vmem>>, vector<1x1x8x128xf32>
    %32 = vector.shape_cast %31 : vector<1x1x8x128xf32> to vector<8x128xf32>
    %33 = vector.shape_cast %30 : vector<8x128xf32> to vector<1x1x8x128xf32>
    tpu.vector_store %arg4[%c0_14, %c0_15, %c0_16, %c0_17], %33 {strides = array<i32>} : memref<1x4x8x128xf32, #tpu.memory_space<vmem>>, vector<1x1x8x128xf32>,
    %c0_18 = arith.constant 0 : index
    %c1 = arith.constant 1 : index
    %c0_19 = arith.constant 0 : index
    %c0_20 = arith.constant 0 : index
    %34 = vector.load %arg4[%c0_18, %c1, %c0_19, %c0_20] : memref<1x4x8x128xf32, #tpu.memory_space<vmem>>, vector<1x1x8x128xf32>
    %35 = vector.shape_cast %34 : vector<1x1x8x128xf32> to vector<8x128xf32>
    %36 = vector.shape_cast %16 : vector<16x128xf32> to vector<2x8x128xf32>
    %cst_21 = arith.constant dense<0.000000e+00> : vector<8x128xf32>
    %37 = vector.multi_reduction <add>, %36, %cst_21 [0] : vector<2x8x128xf32> to vector<8x128xf32>
    %38 = arith.addf %35, %37 : vector<8x128xf32>
    %c0_22 = arith.constant 0 : index
    %c1_23 = arith.constant 1 : index
    %c0_24 = arith.constant 0 : index
    %c0_25 = arith.constant 0 : index
    %39 = vector.load %arg4[%c0_22, %c1_23, %c0_24, %c0_25] : memref<1x4x8x128xf32, #tpu.memory_space<vmem>>, vector<1x1x8x128xf32>
    %40 = vector.shape_cast %39 : vector<1x1x8x128xf32> to vector<8x128xf32>
    %41 = vector.shape_cast %38 : vector<8x128xf32> to vector<1x1x8x128xf32>
    tpu.vector_store %arg4[%c0_22, %c1_23, %c0_24, %c0_25], %41 {strides = array<i32>} : memref<1x4x8x128xf32, #tpu.memory_space<vmem>>, vector<1x1x8x128xf32>,
    %c0_26 = arith.constant 0 : index
    %c2 = arith.constant 2 : index
    %c0_27 = arith.constant 0 : index
    %c0_28 = arith.constant 0 : index
    %42 = vector.load %arg4[%c0_26, %c2, %c0_27, %c0_28] : memref<1x4x8x128xf32, #tpu.memory_space<vmem>>, vector<1x1x8x128xf32>
    %43 = vector.shape_cast %42 : vector<1x1x8x128xf32> to vector<8x128xf32>
    %44 = vector.shape_cast %4 : vector<16x128xf32> to vector<2x8x128xf32>
    %cst_29 = arith.constant dense<0.000000e+00> : vector<8x128xf32>
    %45 = vector.multi_reduction <add>, %44, %cst_29 [0] : vector<2x8x128xf32> to vector<8x128xf32>
    %46 = arith.addf %43, %45 : vector<8x128xf32>
    %c0_30 = arith.constant 0 : index
    %c2_31 = arith.constant 2 : index
    %c0_32 = arith.constant 0 : index
    %c0_33 = arith.constant 0 : index
    %47 = vector.load %arg4[%c0_30, %c2_31, %c0_32, %c0_33] : memref<1x4x8x128xf32, #tpu.memory_space<vmem>>, vector<1x1x8x128xf32>
    %48 = vector.shape_cast %47 : vector<1x1x8x128xf32> to vector<8x128xf32>
    %49 = vector.shape_cast %46 : vector<8x128xf32> to vector<1x1x8x128xf32>
    tpu.vector_store %arg4[%c0_30, %c2_31, %c0_32, %c0_33], %49 {strides = array<i32>} : memref<1x4x8x128xf32, #tpu.memory_space<vmem>>, vector<1x1x8x128xf32>,
    %c0_34 = arith.constant 0 : index
    %c3 = arith.constant 3 : index
    %c0_35 = arith.constant 0 : index
    %c0_36 = arith.constant 0 : index
    %50 = vector.load %arg4[%c0_34, %c3, %c0_35, %c0_36] : memref<1x4x8x128xf32, #tpu.memory_space<vmem>>, vector<1x1x8x128xf32>
    %51 = vector.shape_cast %50 : vector<1x1x8x128xf32> to vector<8x128xf32>
    %52 = vector.shape_cast %24 : vector<16x128xf32> to vector<2x8x128xf32>
    %cst_37 = arith.constant dense<0.000000e+00> : vector<8x128xf32>
    %53 = vector.multi_reduction <add>, %52, %cst_37 [0] : vector<2x8x128xf32> to vector<8x128xf32>
    %54 = arith.addf %51, %53 : vector<8x128xf32>
    %c0_38 = arith.constant 0 : index
    %c3_39 = arith.constant 3 : index
    %c0_40 = arith.constant 0 : index
    %c0_41 = arith.constant 0 : index
    %55 = vector.load %arg4[%c0_38, %c3_39, %c0_40, %c0_41] : memref<1x4x8x128xf32, #tpu.memory_space<vmem>>, vector<1x1x8x128xf32>
    %56 = vector.shape_cast %55 : vector<1x1x8x128xf32> to vector<8x128xf32>
    %57 = vector.shape_cast %54 : vector<8x128xf32> to vector<1x1x8x128xf32>
    tpu.vector_store %arg4[%c0_38, %c3_39, %c0_40, %c0_41], %57 {strides = array<i32>} : memref<1x4x8x128xf32, #tpu.memory_space<vmem>>, vector<1x1x8x128xf32>,
    return
  }
  func.func @transform_0(%arg0: i32, %arg1: i32) -> (i32, i32) {
    %c1_i32 = arith.constant 1 : i32
    %0 = arith.muli %arg0, %c1_i32 : i32
    %1 = arith.addi %0, %arg1 : i32
    %c0_i32 = arith.constant 0 : i32
    %c0_i32_0 = arith.constant 0 : i32
    return %1, %c0_i32 : i32, i32
  }
  func.func @transform_1(%arg0: i32, %arg1: i32) -> (i32, i32) {
    %c1_i32 = arith.constant 1 : i32
    %0 = arith.muli %arg0, %c1_i32 : i32
    %1 = arith.addi %0, %arg1 : i32
    %c0_i32 = arith.constant 0 : i32
    %c0_i32_0 = arith.constant 0 : i32
    return %1, %c0_i32 : i32, i32
  }
  func.func @transform_2(%arg0: i32, %arg1: i32) -> (i32, i32, i32, i32) {
    %c0_i32 = arith.constant 0 : i32
    %c0_i32_0 = arith.constant 0 : i32
    %c0_i32_1 = arith.constant 0 : i32
    %c0_i32_2 = arith.constant 0 : i32
    return %arg0, %c0_i32, %c0_i32_0, %c0_i32_1 : i32, i32, i32, i32
  }
}

</mosaic_0001>

<bundles_post_ra>
// kernel: dice_bce_loss.1
= control target key start
LH: loop header
LB: loop body
LE: loop exit
PB: predicated region body
PF: predicated region fallthrough
CT: control target
= control target key end

     0   :  { %s194_s0 = inlined_call_operand.vmem [shape: f32[16,128], index: 0, kind: input, shape index: {}]   ;;  %s195_s1 = inlined_call_operand.vmem [shape: f32[16,128], index: 1, kind: input, shape index: {}]   ;;  %s196_s2 = inlined_call_operand.vmem [shape: f32[1,4,8,128], index: 2, kind: output, shape index: {}]  }
   0x1   :  { %v63_v0 = vld [vmem:[%s194_s0] sm:$0xff]  ;;  %v64_v1 = vld [vmem:[%s194_s0 + $0x8] sm:$0xff] }
   0x2   :  { %v65_v2 = vld [vmem:[%s195_s1] sm:$0xff]  ;;  %v66_v3 = vld [vmem:[%s195_s1 + $0x8] sm:$0xff]  ;;  %v67_v4 = vand.u32 2147483647, %v63_v0  ;;  %v68_v5 = vand.u32 2147483647, %v64_v1 }
   0x3   :  { %v112_v6 = vadd.f32 %v66_v3, %v65_v2  ;;  %vm81_vm0 = vcmp.ge.f32.partialorder %v63_v0, 0.0  ;;  %vm82_vm1 = vcmp.ge.f32.partialorder %v64_v1, 0.0  ;;  %v87_v18 = vmax.f32 %v63_v0, 0.0 }
   0x4   :  { %v69_v7 = vsub.f32 0.0, %v67_v4  ;;  %v70_v8 = vsub.f32 0.0, %v68_v5  ;;  %v88_v21 = vmax.f32 %v64_v1, 0.0  ;;  %v95_v25 = vmul.f32 %v65_v2, %v63_v0 }
   0x5   :  { %139 = vst [vmem:[%s196_s2 + $0x10] sm:$0xff] %v112_v6  ;;  %v96_v29 = vmul.f32 %v66_v3, %v64_v1 }
   0x6   :  { %v71_v9 = vmul.f32 1.442695, %v69_v7  ;;  %v73_v10 = vmul.f32 1.442695, %v70_v8 }
   0x8   :  { %143 = vpow2.f32 %v71_v9 }
   0x9   :  { %145 = vpow2.f32 %v73_v10 }
  0x12   :  { %v144_v11 = vpop.eup %143 }
  0x13   :  { %v146_v12 = vpop.eup %145  ;;  %v75_v13 = vadd.f32 1.0, %v144_v11 }
  0x14   :  { %v76_v14 = vadd.f32 1.0, %v146_v12 }
  0x15   :  { %147 = vrcp.f32 %v75_v13 }
  0x16   :  { %149 = vrcp.f32 %v76_v14 }
  0x17   :  { %151 = vlog2.f32 %v75_v13 }
  0x18   :  { %153 = vlog2.f32 %v76_v14 }
  0x1f   :  { %v148_v15 = vpop.eup %147 }
  0x20   :  { %v150_v16 = vpop.eup %149  ;;  %v83_v17 = vmul.f32 %v148_v15, %v144_v11 }
  0x21   :  { %v152_v19 = vpop.eup %151  ;;  %v84_v20 = vmul.f32 %v150_v16, %v146_v12 }
  0x22   :  { %v154_v22 = vpop.eup %153  ;;  %v85_v23 = vsel %vm81_vm0, %v148_v15, %v83_v17  ;;  %v90_v24 = vmul.f32 0.6931472, %v152_v19 }
  0x23   :  { %v86_v26 = vsel %vm82_vm1, %v150_v16, %v84_v20  ;;  %v100_v27 = vmul.f32 %v85_v23, %v65_v2  ;;  %v92_v28 = vmul.f32 0.6931472, %v154_v22 }
  0x24   :  { %v101_v30 = vmul.f32 %v86_v26, %v66_v3  ;;  %v107_v31 = vadd.f32 %v86_v26, %v85_v23  ;;  %v93_v32 = vadd.f32 %v90_v24, %v87_v18 }
  0x25   :  { %v94_v33 = vadd.f32 %v92_v28, %v88_v21 }
  0x26   :  { %v102_v34 = vadd.f32 %v101_v30, %v100_v27  ;;  %v97_v35 = vsub.f32 %v93_v32, %v95_v25  ;;  %137 = vst [vmem:[%s196_s2 + $0x8] sm:$0xff] %v107_v31 }
  0x27   :  { %v98_v36 = vsub.f32 %v94_v33, %v96_v29 }
  0x28   :  { %104 = vst [vmem:[%s196_s2] sm:$0xff] %v102_v34 }
  0x29   :  { %v117_v37 = vadd.f32 %v98_v36, %v97_v35 }
  0x2b   :  { %141 = vst [vmem:[%s196_s2 + $0x18] sm:$0xff] %v117_v37 }

</bundles_post_ra>
